<compile_context>
chip_gen: v7x
topology: tpu7x:2x2x1
jax: 0.10.0
libtpu: 0.0.40
codegen_flags: <defaults>
</compile_context>

<pallas_src>
import jax
import jax.numpy as jnp
import numpy as np
from jax.experimental import pallas as pl
from jax.experimental.pallas import tpu as pltpu

NUM_ASPECTS = 5  # the PyTorch forward hard-codes `for k in range(5)`
_LANE = 128


def _rating_pred_kernel(u_ref,   # VMEM (TB, A*H)  user aspect reps (native layout)
                        v_ref,   # VMEM (TB, A*H)  item aspect reps (native layout)
                        wo_ref,  # VMEM (TB, A+1)  cols 0..A-1 = uImpt*iImpt, col A = offsets
                        out_ref):  # VMEM (TB, 1)   f32
    ah = u_ref.shape[1]
    h1 = ah // NUM_ASPECTS
    wo = wo_ref[...]                                        # (TB, A+1) f32
    acc = wo[:, NUM_ASPECTS:NUM_ASPECTS + 1]                # (TB, 1) combined offsets
    # Static unroll over the 5 aspects; each step loads a (TB, h1) lane window,
    # multiplies (VALU) and lane-reduces (XLU) -> all hidden under the DMAs.
    for k in range(NUM_ASPECTS):
        lo = k * h1
        u_k = u_ref[:, lo:lo + h1].astype(jnp.float32)      # (TB, h1)
        v_k = v_ref[:, lo:lo + h1].astype(jnp.float32)      # (TB, h1)
        asp = jnp.sum(u_k * v_k, axis=1, keepdims=True)     # (TB, 1) dot over h1
        acc = acc + wo[:, k:k + 1] * asp
    out_ref[...] = acc.astype(out_ref.dtype)


def anr_rating_pred(user_asp_rep, item_asp_rep, user_asp_impt, item_asp_impt,
                    batch_uid, batch_iid, params, *, tile_b=4096):
    """Pallas implementation of ANR_RatingPred.forward (eval mode).

    user_asp_rep / item_asp_rep: (B, A, H)  float32 or bfloat16
    user_asp_impt / item_asp_impt: (B, A)
    Returns (B, 1) float32, matching the PyTorch module.
    """
    # TODO(synk): nn.Dropout(p=0.5) is stochastic in training; in eval mode it is
    # the identity, which is what we implement here.
    bsz, num_asp, h1 = user_asp_rep.shape
    assert num_asp == NUM_ASPECTS
    ah = num_asp * h1

    # ---- layout: native row-major, contiguous reshape only (no HBM transpose) ----
    u2 = user_asp_rep.reshape(bsz, ah)                      # (B, A*H)
    v2 = item_asp_rep.reshape(bsz, ah)                      # (B, A*H)

    # Combine the two importances and the three offsets into one tiny side input.
    w = (user_asp_impt.astype(jnp.float32) *
         item_asp_impt.astype(jnp.float32))                 # (B, A)
    off = (params["uid_userOffset"][batch_uid, 0]
           + params["iid_itemOffset"][batch_iid, 0]
           + params["globalOffset"][0]).astype(jnp.float32)[:, None]  # (B, 1)
    wo = jnp.concatenate([w, off], axis=1)                  # (B, A+1) f32

    # ---- batch tiling -------------------------------------------------------
    if bsz <= tile_b:
        if bsz >= 2048:
            # Cap the tile at ~bsz/2 (rounded to 128) so the grid has >=2
            # parallel steps and both v7x TensorCores stream HBM.
            tb = pl.cdiv(pl.cdiv(bsz, 2), _LANE) * _LANE
        else:
            tb = bsz                                        # single full-extent block
    else:
        tb = max(_LANE, (tile_b // _LANE) * _LANE)          # sublane blocks: mult of 8 (128 ok)
    grid = (pl.cdiv(bsz, tb),)

    # ---- VMEM budget: re-derive from the actual (lane-padded, double-buffered)
    # tile footprint so it is valid on v7x (64 MiB/TC) as well as v5e/v6e. ----
    def _pad(n, m):
        return ((n + m - 1) // m) * m

    rep_tile = tb * _pad(ah, _LANE) * user_asp_rep.dtype.itemsize
    wo_tile = tb * _pad(num_asp + 1, _LANE) * 4
    out_tile = tb * _pad(1, _LANE) * 4
    vmem_need = 2 * (2 * rep_tile + wo_tile + out_tile)     # x2 for double buffering
    vmem_limit = int(min(max(vmem_need + (4 << 20), 32 << 20), 112 << 20))

    cost = pl.CostEstimate(
        flops=2 * bsz * ah + 4 * bsz * num_asp,
        transcendentals=0,
        bytes_accessed=(u2.size * u2.dtype.itemsize
                        + v2.size * v2.dtype.itemsize
                        + wo.size * 4 + bsz * 4),
    )

    out = pl.pallas_call(
        _rating_pred_kernel,
        out_shape=jax.ShapeDtypeStruct((bsz, 1), jnp.float32),
        grid=grid,
        in_specs=[
            pl.BlockSpec((tb, ah), lambda b: (b, 0)),            # userAspRep (native)
            pl.BlockSpec((tb, ah), lambda b: (b, 0)),            # itemAspRep (native)
            pl.BlockSpec((tb, num_asp + 1), lambda b: (b, 0)),   # impt product + offsets
        ],
        out_specs=pl.BlockSpec((tb, 1), lambda b: (b, 0)),
        compiler_params=pltpu.CompilerParams(
            dimension_semantics=("parallel",),        # megacore shard on v7x
            vmem_limit_bytes=vmem_limit,
        ),
        cost_estimate=cost,
    )(u2, v2, wo)

    return out


def init_params(num_users, num_items):
    # Matches the PyTorch __init__: all offsets filled with 0.
    return {
        "globalOffset": jnp.zeros((1,), jnp.float32),
        "uid_userOffset": jnp.zeros((num_users, 1), jnp.float32),
        "iid_itemOffset": jnp.zeros((num_items, 1), jnp.float32),
    }


def _reference(user_asp_rep, item_asp_rep, user_asp_impt, item_asp_impt,
               batch_uid, batch_iid, params):
    u = user_asp_rep.astype(jnp.float32)
    v = item_asp_rep.astype(jnp.float32)
    asp = jnp.sum(u * v, axis=-1)                                    # (B, A)
    pred = jnp.sum(user_asp_impt * item_asp_impt * asp, axis=1, keepdims=True)
    pred = pred + params["uid_userOffset"][batch_uid]
    pred = pred + params["iid_itemOffset"][batch_iid]
    pred = pred + params["globalOffset"]
    return pred


def _run_case(key, bsz, h1, num_users, num_items, rep_dtype, tile_b, offsets_zero):
    k1, k2, k3, k4, k5, k6, k7, k8, k9 = jax.random.split(key, 9)
    user_asp_rep = jax.random.normal(k1, (bsz, NUM_ASPECTS, h1)).astype(rep_dtype)
    item_asp_rep = jax.random.normal(k2, (bsz, NUM_ASPECTS, h1)).astype(rep_dtype)
    user_asp_impt = jax.nn.softmax(
        jax.random.normal(k3, (bsz, NUM_ASPECTS), dtype=jnp.float32), axis=-1)
    item_asp_impt = jax.nn.softmax(
        jax.random.normal(k4, (bsz, NUM_ASPECTS), dtype=jnp.float32), axis=-1)
    batch_uid = jax.random.randint(k5, (bsz,), 0, num_users, jnp.int32)
    batch_iid = jax.random.randint(k6, (bsz,), 0, num_items, jnp.int32)

    params = init_params(num_users, num_items)
    if not offsets_zero:
        params = {
            "globalOffset": jax.random.normal(k7, (1,), jnp.float32),
            "uid_userOffset": jax.random.normal(k8, (num_users, 1), jnp.float32),
            "iid_itemOffset": jax.random.normal(k9, (num_items, 1), jnp.float32),
        }

    out = anr_rating_pred(user_asp_rep, item_asp_rep, user_asp_impt,
                          item_asp_impt, batch_uid, batch_iid, params,
                          tile_b=tile_b)
    out = jax.block_until_ready(out)
    ref = _reference(user_asp_rep, item_asp_rep, user_asp_impt,
                     item_asp_impt, batch_uid, batch_iid, params)
    np.testing.assert_allclose(np.asarray(out), np.asarray(ref),
                               rtol=1e-5, atol=1e-5)


if __name__ == "__main__":
    key = jax.random.PRNGKey(0)
    k_small, k_mid, k_big = jax.random.split(key, 3)

    # Small case matching the module spec (single full-extent block).
    _run_case(k_small, bsz=2, h1=32, num_users=10, num_items=12,
              rep_dtype=jnp.float32, tile_b=4096, offsets_zero=True)

    # Multi-step pipelined grid (grid=(3,)), bf16 reps (halved HBM traffic,
    # f32 accumulation in-kernel) and non-zero offsets.
    _run_case(k_mid, bsz=384, h1=32, num_users=10, num_items=12,
              rep_dtype=jnp.bfloat16, tile_b=128, offsets_zero=False)

    # Larger batch exercising the >=2-block megacore split path and a partial
    # last block (bsz not a multiple of the tile).
    _run_case(k_big, bsz=2500, h1=32, num_users=50, num_items=60,
              rep_dtype=jnp.float32, tile_b=4096, offsets_zero=False)

    print("KERNEL_OK")
</pallas_src>

<mosaic_0001>
module attributes {stable_mosaic.version = 11 : i64} {
  func.func @_rating_pred_kernel(%arg0: i32, %arg1: memref<2x160xf32, #tpu.memory_space<vmem>>, %arg2: memref<2x160xf32, #tpu.memory_space<vmem>>, %arg3: memref<2x6xf32, #tpu.memory_space<vmem>>, %arg4: memref<2x1xf32, #tpu.memory_space<vmem>>) attributes {dimension_semantics = [#tpu.dimension_semantics<parallel>], iteration_bounds = array<i64: 1>, scalar_prefetch = 0 : i64, scratch_operands = 0 : i64, tpu.core_type = #tpu.core_type<tc>, window_params = [{transform_indices = @transform_0, window_bounds = array<i64: 2, 160>}, {transform_indices = @transform_1, window_bounds = array<i64: 2, 160>}, {transform_indices = @transform_2, window_bounds = array<i64: 2, 6>}, {transform_indices = @transform_3, window_bounds = array<i64: 2, 1>}]} {
    %c0 = arith.constant 0 : index
    %c0_0 = arith.constant 0 : index
    %0 = vector.load %arg3[%c0, %c0_0] : memref<2x6xf32, #tpu.memory_space<vmem>>, vector<2x6xf32>
    %1 = vector.extract_strided_slice %0 {offsets = [0, 5], sizes = [2, 1], strides = [1, 1]} : vector<2x6xf32> to vector<2x1xf32>
    %c0_1 = arith.constant 0 : index
    %c0_2 = arith.constant 0 : index
    %2 = vector.load %arg1[%c0_1, %c0_2] : memref<2x160xf32, #tpu.memory_space<vmem>>, vector<2x32xf32>
    %c0_3 = arith.constant 0 : index
    %c0_4 = arith.constant 0 : index
    %3 = vector.load %arg2[%c0_3, %c0_4] : memref<2x160xf32, #tpu.memory_space<vmem>>, vector<2x32xf32>
    %4 = arith.mulf %2, %3 : vector<2x32xf32>
    %cst = arith.constant dense<0.000000e+00> : vector<2xf32>
    %5 = vector.multi_reduction <add>, %4, %cst [1] : vector<2x32xf32> to vector<2xf32>
    %6 = vector.shape_cast %5 : vector<2xf32> to vector<2x1xf32>
    %7 = vector.extract_strided_slice %0 {offsets = [0, 0], sizes = [2, 1], strides = [1, 1]} : vector<2x6xf32> to vector<2x1xf32>
    %8 = arith.mulf %7, %6 : vector<2x1xf32>
    %9 = arith.addf %1, %8 : vector<2x1xf32>
    %c0_5 = arith.constant 0 : index
    %c32 = arith.constant 32 : index
    %10 = vector.load %arg1[%c0_5, %c32] : memref<2x160xf32, #tpu.memory_space<vmem>>, vector<2x32xf32>
    %c0_6 = arith.constant 0 : index
    %c32_7 = arith.constant 32 : index
    %11 = vector.load %arg2[%c0_6, %c32_7] : memref<2x160xf32, #tpu.memory_space<vmem>>, vector<2x32xf32>
    %12 = arith.mulf %10, %11 : vector<2x32xf32>
    %cst_8 = arith.constant dense<0.000000e+00> : vector<2xf32>
    %13 = vector.multi_reduction <add>, %12, %cst_8 [1] : vector<2x32xf32> to vector<2xf32>
    %14 = vector.shape_cast %13 : vector<2xf32> to vector<2x1xf32>
    %15 = vector.extract_strided_slice %0 {offsets = [0, 1], sizes = [2, 1], strides = [1, 1]} : vector<2x6xf32> to vector<2x1xf32>
    %16 = arith.mulf %15, %14 : vector<2x1xf32>
    %17 = arith.addf %9, %16 : vector<2x1xf32>
    %c0_9 = arith.constant 0 : index
    %c64 = arith.constant 64 : index
    %18 = vector.load %arg1[%c0_9, %c64] : memref<2x160xf32, #tpu.memory_space<vmem>>, vector<2x32xf32>
    %c0_10 = arith.constant 0 : index
    %c64_11 = arith.constant 64 : index
    %19 = vector.load %arg2[%c0_10, %c64_11] : memref<2x160xf32, #tpu.memory_space<vmem>>, vector<2x32xf32>
    %20 = arith.mulf %18, %19 : vector<2x32xf32>
    %cst_12 = arith.constant dense<0.000000e+00> : vector<2xf32>
    %21 = vector.multi_reduction <add>, %20, %cst_12 [1] : vector<2x32xf32> to vector<2xf32>
    %22 = vector.shape_cast %21 : vector<2xf32> to vector<2x1xf32>
    %23 = vector.extract_strided_slice %0 {offsets = [0, 2], sizes = [2, 1], strides = [1, 1]} : vector<2x6xf32> to vector<2x1xf32>
    %24 = arith.mulf %23, %22 : vector<2x1xf32>
    %25 = arith.addf %17, %24 : vector<2x1xf32>
    %c0_13 = arith.constant 0 : index
    %c96 = arith.constant 96 : index
    %26 = vector.load %arg1[%c0_13, %c96] : memref<2x160xf32, #tpu.memory_space<vmem>>, vector<2x32xf32>
    %c0_14 = arith.constant 0 : index
    %c96_15 = arith.constant 96 : index
    %27 = vector.load %arg2[%c0_14, %c96_15] : memref<2x160xf32, #tpu.memory_space<vmem>>, vector<2x32xf32>
    %28 = arith.mulf %26, %27 : vector<2x32xf32>
    %cst_16 = arith.constant dense<0.000000e+00> : vector<2xf32>
    %29 = vector.multi_reduction <add>, %28, %cst_16 [1] : vector<2x32xf32> to vector<2xf32>
    %30 = vector.shape_cast %29 : vector<2xf32> to vector<2x1xf32>
    %31 = vector.extract_strided_slice %0 {offsets = [0, 3], sizes = [2, 1], strides = [1, 1]} : vector<2x6xf32> to vector<2x1xf32>
    %32 = arith.mulf %31, %30 : vector<2x1xf32>
    %33 = arith.addf %25, %32 : vector<2x1xf32>
    %c0_17 = arith.constant 0 : index
    %c128 = arith.constant 128 : index
    %34 = vector.load %arg1[%c0_17, %c128] : memref<2x160xf32, #tpu.memory_space<vmem>>, vector<2x32xf32>
    %c0_18 = arith.constant 0 : index
    %c128_19 = arith.constant 128 : index
    %35 = vector.load %arg2[%c0_18, %c128_19] : memref<2x160xf32, #tpu.memory_space<vmem>>, vector<2x32xf32>
    %36 = arith.mulf %34, %35 : vector<2x32xf32>
    %cst_20 = arith.constant dense<0.000000e+00> : vector<2xf32>
    %37 = vector.multi_reduction <add>, %36, %cst_20 [1] : vector<2x32xf32> to vector<2xf32>
    %38 = vector.shape_cast %37 : vector<2xf32> to vector<2x1xf32>
    %39 = vector.extract_strided_slice %0 {offsets = [0, 4], sizes = [2, 1], strides = [1, 1]} : vector<2x6xf32> to vector<2x1xf32>
    %40 = arith.mulf %39, %38 : vector<2x1xf32>
    %41 = arith.addf %33, %40 : vector<2x1xf32>
    %c0_21 = arith.constant 0 : index
    %c0_22 = arith.constant 0 : index
    %42 = vector.load %arg4[%c0_21, %c0_22] : memref<2x1xf32, #tpu.memory_space<vmem>>, vector<2x1xf32>
    tpu.vector_store %arg4[%c0_21, %c0_22], %41 {strides = array<i32>} : memref<2x1xf32, #tpu.memory_space<vmem>>, vector<2x1xf32>,
    return
  }
  func.func @transform_0(%arg0: i32) -> (i32, i32) {
    %c0_i32 = arith.constant 0 : i32
    %c0_i32_0 = arith.constant 0 : i32
    return %arg0, %c0_i32 : i32, i32
  }
  func.func @transform_1(%arg0: i32) -> (i32, i32) {
    %c0_i32 = arith.constant 0 : i32
    %c0_i32_0 = arith.constant 0 : i32
    return %arg0, %c0_i32 : i32, i32
  }
  func.func @transform_2(%arg0: i32) -> (i32, i32) {
    %c0_i32 = arith.constant 0 : i32
    %c0_i32_0 = arith.constant 0 : i32
    return %arg0, %c0_i32 : i32, i32
  }
  func.func @transform_3(%arg0: i32) -> (i32, i32) {
    %c0_i32 = arith.constant 0 : i32
    %c0_i32_0 = arith.constant 0 : i32
    return %arg0, %c0_i32 : i32, i32
  }
}

</mosaic_0001>

<bundles_post_ra>
// kernel: tpu_custom_call.1
= control target key start
LH: loop header
LB: loop body
LE: loop exit
PB: predicated region body
PF: predicated region fallthrough
CT: control target
= control target key end

     0   :  { %8 = vsyncpa [#allocation3], 0  ;;  %s242_s0 = inlined_call_operand.hbm [shape: f32[2,160], index: 0, kind: input, shape index: {}]   ;;  %s243_s1 = inlined_call_operand.hbm [shape: f32[2,160], index: 1, kind: input, shape index: {}]   ;;  %s244_s2 = inlined_call_operand.vmem [shape: f32[2,6], index: 2, kind: input, shape index: {}]   ;;  %s245_s3 = inlined_call_operand.vmem [shape: f32[2,1], index: 3, kind: output, shape index: {}]  }
   0x1   :  { %9 = vsyncpa [#allocation5], 0  ;;  %s180_s12 = smov [#allocation2]   ;;  %s181_s14 = smov [#allocation4]  }
   0x2   :  { %s16_s13 = sshll.u32 %s180_s12, 4  ;;  %s26_s15 = sshll.u32 %s181_s14, 4  ;;  %s17_s13 = int_to_ptr.vmem [resolvable:$true] %s16_s13  ;;  %s27_s15 = int_to_ptr.vmem [resolvable:$true] %s26_s15 }
   0x3   :  { %s132_s18 = scalar_lea.hbm %s242_s0, 64 }
   0x4   :  { %p133_p0 = scmp.ne.s32.totalorder %s242_s0, %s132_s18  ;;  %p136_p1 = scmp.lt.u32.totalorder %s132_s18, %s242_s0 }
   0x6   :  { %p138_p2 = pnand %p136_p1, %p133_p0 }
   0x8   :  { %141 = shalt.err (!%p138_p2)
}
   0x9   :  { %s142_s23 = scalar_lea.vmem %s17_s13, 64  ;;  %p147_p4 = scmp.lt.s32.totalorder %s17_s13, %s17_s13 }
   0xa   :  { %p143_p3 = scmp.ne.s32.totalorder %s17_s13, %s142_s23  ;;  %p148_p5 = scmp.lt.s32.totalorder %s142_s23, %s142_s23 }
   0xc   :  { %p149_p6 = por %p148_p5, %p147_p4 }
   0xe   :  { %p150_p7 = pnand %p149_p6, %p143_p3 }
  0x10   :  { %153 = shalt.err (!%p150_p7)
}
  0x11   :  { %19 = dma.hbm_to_vmem [thread:$0]  %s242_s0, 64, %s17_s13, [#allocation3]  }
  0x12   :  { %s154_s28 = scalar_lea.hbm %s243_s1, 64 }
  0x13   :  { %p155_p8 = scmp.ne.s32.totalorder %s243_s1, %s154_s28  ;;  %p158_p9 = scmp.lt.u32.totalorder %s154_s28, %s243_s1 }
  0x15   :  { %p160_p10 = pnand %p158_p9, %p155_p8 }
  0x17   :  { %163 = shalt.err (!%p160_p10)
}
  0x18   :  { %s164_s6 = scalar_lea.vmem %s27_s15, 64  ;;  %p169_p12 = scmp.lt.s32.totalorder %s27_s15, %s27_s15 }
  0x19   :  { %p165_p11 = scmp.ne.s32.totalorder %s27_s15, %s164_s6  ;;  %p170_p13 = scmp.lt.s32.totalorder %s164_s6, %s164_s6 }
  0x1b   :  { %p171_p0 = por %p170_p13, %p169_p12 }
  0x1d   :  { %p172_p1 = pnand %p171_p0, %p165_p11 }
  0x1f   :  { %175 = shalt.err (!%p172_p1)
}
  0x20   :  { %29 = dma.hbm_to_vmem [thread:$0]  %s243_s1, 64, %s27_s15, [#allocation5]  }
  0x21   :  { %176 = dma.done.wait [#allocation3], 64  }
  0x22   :  { %177 = vsyncadd [#allocation3], 4294967232 }
  0x23   :  { %178 = dma.done.wait [#allocation5], 64  }
  0x24   :  { %179 = vsyncadd [#allocation5], 4294967232  ;;  %v56_v0 = vlaneseq  ;;  %v182_v1 = vmov 1983009808   ;;  %v39_v6 = vld [vmem:[#allocation2] sm:$0x3] }
  0x25   :  { %v54_v2 = vunpack.c.l.s4 %v182_v1  ;;  %v40_v7 = vld [vmem:[#allocation4] sm:$0x3]  ;;  %s183_s8 = smov 96   ;;  %s184_s9 = smov 32   ;;  %vm42_vm0 = vcmask 254976   ;;  %vm112_vm1 = vcmask 1024  }
  0x26   :  { %v57_v3 = vshrl.u32 %v56_v0, 7  ;;  %v41_v8 = vmul.f32 %v40_v7, %v39_v6  ;;  %s185_s10 = smov 64   ;;  %v96_v13 = vld [vmem:[#allocation2 + $0x2] sm:$0x3]  ;;  %v97_v14 = vld [vmem:[#allocation4 + $0x2] sm:$0x3] }
  0x27   :  { %v55_v4 = vunpack.c.0.s8 %v54_v2  ;;  %v98_v17 = vmul.f32 %v97_v14, %v96_v13  ;;  %v38_v21 = vld [vmem:[%s244_s2] sm:$0x3]  ;;  %s186_s12 = smov 5   ;;  %s187_s13 = smov 4  }
  0x28   :  { %v43_v10 = vsel %vm42_vm0, %v41_v8, 0.0  ;;  %s188_s14 = smov 3   ;;  %s189_s15 = smov 2  }
  0x29   :  { %v58_v5 = vsub.s32 %v55_v4, %v57_v3  ;;  %v99_v20 = vsel %vm42_vm0, %v98_v17, 0.0  ;;  %s190_s16 = smov 1   ;;  %s191_s2 = smov 123  }
  0x2b   :  { %v59_v9 = vrot.slane %v41_v8, %v58_v5 }
  0x2d   :  { %60 = vrot.lane.b32.xlu0 %v59_v9, %s183_s8  ;;  %84 = vrot.lane.b32.xlu1 %v59_v9, %s184_s9 }
  0x31   :  { %72 = vrot.lane.b32.xlu0 %v59_v9, %s185_s10 }
  0x51   :  { %44 = vadd.xlane.f32.xlu1 %v43_v10 }
  0x9f   :  { %v61_v11 = vpop.permute.xlu0 %60  ;;  %v85_v12 = vpop.permute.xlu1 %84 }
  0xa0   :  { %v63_v15 = vsel %vm42_vm0, %v61_v11, 0.0  ;;  %v87_v16 = vsel %vm42_vm0, %v85_v12, 0.0 }
  0xa1   :  { %64 = vadd.xlane.f32.xlu0 %v63_v15  ;;  %88 = vadd.xlane.f32.xlu1 %v87_v16 }
  0xa3   :  { %v73_v18 = vpop.permute.xlu0 %72 }
  0xa4   :  { %v75_v19 = vsel %vm42_vm0, %v73_v18, 0.0 }
  0xa5   :  { %76 = vadd.xlane.f32.xlu0 %v75_v19 }
  0xa9   :  { %100 = vadd.xlane.f32.xlu0 %v99_v20 }
  0xde   :  { %v45_v22 = vpop.xlane.xlu1 %44 }
  0xdf   :  { %v46_v23 = vmul.f32 %v45_v22, %v38_v21 }
  0xe1   :  { %48 = vrot.lane.b32.xlu1 %v46_v23, %s186_s12 }
 0x12e   :  { %v65_v24 = vpop.xlane.xlu0 %64  ;;  %v89_v27 = vpop.xlane.xlu1 %88 }
 0x12f   :  { %v66_v25 = vmul.f32 %v65_v24, %v38_v21  ;;  %v90_v29 = vmul.f32 %v89_v27, %v38_v21 }
 0x131   :  { %68 = vrot.lane.b32.xlu0 %v66_v25, %s187_s13 }
 0x132   :  { %v77_v26 = vpop.xlane.xlu0 %76 }
 0x133   :  { %v78_v28 = vmul.f32 %v77_v26, %v38_v21 }
 0x135   :  { %80 = vrot.lane.b32.xlu1 %v78_v28, %s188_s14 }
 0x136   :  { %v101_v30 = vpop.xlane.xlu0 %100 }
 0x137   :  { %v102_v31 = vmul.f32 %v101_v30, %v38_v21 }
 0x139   :  { %92 = vrot.lane.b32.xlu1 %v90_v29, %s189_s15  ;;  %104 = vrot.lane.b32.xlu0 %v102_v31, %s190_s16 }
 0x153   :  { %v49_v32 = vpop.permute.xlu1 %48 }
 0x154   :  { %v51_v33 = vadd.f32 %v49_v32, %v38_v21 }
 0x1a3   :  { %v69_v34 = vpop.permute.xlu0 %68 }
 0x1a4   :  { %v71_v36 = vadd.f32 %v69_v34, %v51_v33 }
 0x1a7   :  { %v81_v35 = vpop.permute.xlu1 %80 }
 0x1a8   :  { %v83_v37 = vadd.f32 %v81_v35, %v71_v36 }
 0x1ab   :  { %v93_v38 = vpop.permute.xlu1 %92  ;;  %v105_v39 = vpop.permute.xlu0 %104 }
 0x1ac   :  { %v95_v40 = vadd.f32 %v93_v38, %v83_v37 }
 0x1ae   :  { %v107_v41 = vadd.f32 %v105_v39, %v95_v40 }
 0x1b0   :  { %109 = vrot.lane.b32.xlu1 %v107_v41, %s191_s2 }
 0x222   :  { %v110_v42 = vpop.permute.xlu1 %109 }
 0x223   :  { %113 = vst.msk [vmem:[%s245_s3] sm:$0x3] %vm112_vm1, %v110_v42 }
 0x224   :  { %118 = vsyncpa [#allocation3], 1 }
 0x225   :  { %119 = vsyncpa [#allocation5], 1 }

</bundles_post_ra>
